<compile_context>
chip_gen: v7x
topology: tpu7x:2x2x1
jax: 0.10.0
libtpu: 0.0.40
codegen_flags: <defaults>
</compile_context>

<pallas_src>
import jax
import jax.numpy as jnp
from jax.experimental import pallas as pl
from jax.experimental.pallas import tpu as pltpu


def _round_up(v, m):
    return ((v + m - 1) // m) * m


def _vmem_capacity_bytes(default_bytes=64 << 20):
    """Physical VMEM of the attached TPU; conservative fallback (v7x: 64 MiB)."""
    try:
        info = pltpu.get_tpu_info()
        cap = int(getattr(info, "vmem_capacity_bytes", 0) or 0)
        if cap > 0:
            return cap
    except Exception:
        pass
    return default_bytes


def _default_tile_n(n):
    # Prefer >= 2 programs on the "parallel" N axis so v7x megacore can split
    # work across its two TensorCores; tile_n must divide N.
    if n <= 1:
        return n
    return max(d for d in range(1, n) if n % d == 0)


def channel_attention(x, w1, b1, w2, b2, *, tile_hw=None, tile_n=None,
                      target_tile_bytes=None, vmem_limit_bytes=None):
    """x: (N, C, H, W) -> (N, C, 1, 1) f32, matching the PyTorch module.

    w1: (C, Cr), b1: (1, Cr), w2: (Cr, C), b2: (1, C)  (1x1 convs as matmuls).
    """
    n, c, h, w = x.shape
    hw = h * w
    cr = w1.shape[1]

    vmem_cap = _vmem_capacity_bytes()

    # --- N tiling ("parallel" axis). ---
    if tile_n is None:
        tile_n = _default_tile_n(n)
    assert n % tile_n == 0, "tile_n must divide N"
    n_tiles = n // tile_n

    # --- HW tiling ("arbitrary" reduction axis). Biggest tile that fits the
    #     per-generation VMEM budget; multiples of 128 lanes. ---
    if target_tile_bytes is None:
        target_tile_bytes = max(4 << 20, min(vmem_cap // 8, 16 << 20))
    if tile_hw is None:
        t = target_tile_bytes // (4 * tile_n * c)
        t = max(128, (t // 128) * 128)
        tile_hw = min(t, _round_up(hw, 128))
    assert tile_hw % 128 == 0, "tile_hw must be a multiple of 128"
    hw_tiles = pl.cdiv(hw, tile_hw)
    need_mask = (hw % tile_hw) != 0      # ragged tail masked in-kernel, no pad
    n_chunks = tile_hw // 128

    # Free metadata reshape (no extra HBM pass).
    x_flat = x.reshape(n, c, hw)

    # --- VMEM budget: double-buffered x tile + accumulators + params + out,
    #     capped by the actual generation's physical VMEM. ---
    if vmem_limit_bytes is None:
        est = 4 * (2 * tile_n * c * tile_hw            # x (double-buffered)
                   + 2 * tile_n * c * 128              # sum/max accumulators
                   + 2 * (c * cr + cr + cr * c + c)    # weights / biases
                   + 2 * tile_n * c)                   # output
        cap = max(16 << 20, min(int(vmem_cap * 0.75), 112 << 20))
        vmem_limit_bytes = min(max(int(est * 1.5) + (4 << 20), 16 << 20), cap)
        vmem_limit_bytes = max(vmem_limit_bytes, est + (2 << 20))

    inv_hw = 1.0 / hw  # divide by the TRUE spatial size
    # Hoist accumulators into the loop carry only when they fit comfortably in
    # the vreg file (each (tile_n, C, 128) f32 accumulator is tile_n*C/8 vregs).
    hoist_acc = (tile_n * c) <= 128

    def kernel(x_ref, w1_ref, b1_ref, w2_ref, b2_ref, out_ref, sum_ref, max_ref):
        k = pl.program_id(1)

        @pl.when(k == 0)
        def _init():
            sum_ref[...] = jnp.zeros(sum_ref.shape, sum_ref.dtype)
            max_ref[...] = jnp.full(max_ref.shape, -jnp.inf, max_ref.dtype)

        def accumulate(masked):
            if masked:
                # (1,1,128) lane iota + scalar offset, hoisted out of the loop.
                lane_pos = (k * tile_hw +
                            jax.lax.broadcasted_iota(jnp.int32, (1, 1, 128), 2))

            def load_chunk(j):
                off = pl.multiple_of(j * 128, 128)
                xc = x_ref[:, :, pl.ds(off, 128)].astype(jnp.float32)
                if masked:
                    valid = (lane_pos + j * 128) < hw
                    return (jnp.where(valid, xc, 0.0),
                            jnp.where(valid, xc, -jnp.inf))
                return xc, xc

            if hoist_acc:
                def body(j, carry):
                    s, m = carry
                    xs, xm = load_chunk(j)
                    return s + xs, jnp.maximum(m, xm)
                s, m = jax.lax.fori_loop(0, n_chunks, body,
                                         (sum_ref[...], max_ref[...]),
                                         unroll=min(8, n_chunks))
                sum_ref[...] = s
                max_ref[...] = m
            else:
                def body(j, carry):
                    xs, xm = load_chunk(j)
                    sum_ref[...] = sum_ref[...] + xs
                    max_ref[...] = jnp.maximum(max_ref[...], xm)
                    return carry
                jax.lax.fori_loop(0, n_chunks, body, 0,
                                  unroll=min(4, n_chunks))

        if need_mask:
            @pl.when(k < hw_tiles - 1)
            def _interior():
                accumulate(masked=False)

            @pl.when(k == hw_tiles - 1)
            def _tail():
                accumulate(masked=True)
        else:
            accumulate(masked=False)

        @pl.when(k == pl.num_programs(1) - 1)
        def _finalize():
            # Single cross-lane (XLU) reduce at the very end.
            avg = jnp.sum(sum_ref[...], axis=-1) * inv_hw        # (tile_n, C)
            mx = jnp.max(max_ref[...], axis=-1)                  # (tile_n, C)
            w1v = w1_ref[...]
            b1v = b1_ref[...]
            h_avg = jnp.maximum(
                jnp.dot(avg, w1v, preferred_element_type=jnp.float32) + b1v, 0.0)
            h_max = jnp.maximum(
                jnp.dot(mx, w1v, preferred_element_type=jnp.float32) + b1v, 0.0)
            # fc(avg)+fc(max) = (h_avg + h_max) @ W2 + 2*b2 (fused 2nd matmul)
            o = (jnp.dot(h_avg + h_max, w2_ref[...],
                         preferred_element_type=jnp.float32)
                 + 2.0 * b2_ref[...])
            out_ref[...] = jax.nn.sigmoid(o)[None].astype(out_ref.dtype)

    out = pl.pallas_call(
        kernel,
        out_shape=jax.ShapeDtypeStruct((n_tiles, tile_n, c), jnp.float32),
        grid_spec=pltpu.PrefetchScalarGridSpec(
            num_scalar_prefetch=0,
            grid=(n_tiles, hw_tiles),
            in_specs=[
                pl.BlockSpec((tile_n, c, tile_hw), lambda i, k: (i, 0, k)),
                pl.BlockSpec((c, cr), lambda i, k: (0, 0)),   # stay VMEM-resident
                pl.BlockSpec((1, cr), lambda i, k: (0, 0)),
                pl.BlockSpec((cr, c), lambda i, k: (0, 0)),
                pl.BlockSpec((1, c), lambda i, k: (0, 0)),
            ],
            out_specs=pl.BlockSpec((1, tile_n, c), lambda i, k: (i, 0, 0)),
            scratch_shapes=[
                pltpu.VMEM((tile_n, c, 128), jnp.float32),   # running sum
                pltpu.VMEM((tile_n, c, 128), jnp.float32),   # running max
            ],
        ),
        compiler_params=pltpu.CompilerParams(
            dimension_semantics=("parallel", "arbitrary"),
            vmem_limit_bytes=vmem_limit_bytes,
        ),
    )(x_flat, w1, b1, w2, b2)

    return out.reshape(n, c, 1, 1)


def _reference(x, w1, b1, w2, b2):
    # Pure-JAX reference mirroring the PyTorch forward exactly.
    avg = jnp.mean(x, axis=(2, 3))   # (N, C)
    mx = jnp.max(x, axis=(2, 3))     # (N, C)

    def fc(v):
        hh = jnp.maximum(v @ w1 + b1, 0.0)
        return hh @ w2 + b2

    out = jax.nn.sigmoid(fc(avg) + fc(mx))
    return out.reshape(*out.shape, 1, 1)


if __name__ == "__main__":
    key = jax.random.PRNGKey(0)
    k_x1, k_x2, k_p, k_big = jax.random.split(key, 4)

    def make_params(kp, C, reduction_ratio=16):
        Cr = C // reduction_ratio
        kw1, kb1, kw2, kb2 = jax.random.split(kp, 4)
        # PyTorch Conv2d(C, Cr, 1) weight is (Cr, C, 1, 1); stored here in
        # transposed matmul form (C, Cr). Same for the second conv.
        w1 = jax.random.normal(kw1, (C, Cr), dtype=jnp.float32) * 0.1
        b1 = jax.random.normal(kb1, (1, Cr), dtype=jnp.float32) * 0.1
        w2 = jax.random.normal(kw2, (Cr, C), dtype=jnp.float32) * 0.1
        b2 = jax.random.normal(kb2, (1, C), dtype=jnp.float32) * 0.1
        return w1, b1, w2, b2

    def check(x, params, **kw):
        out = jax.block_until_ready(channel_attention(x, *params, **kw))
        ref = _reference(x, *params)
        assert out.shape == (x.shape[0], x.shape[1], 1, 1), out.shape
        err = float(jnp.max(jnp.abs(out - ref)))
        assert jnp.allclose(out, ref, atol=1e-5, rtol=1e-5), err

    N, C = 2, 64
    params = make_params(k_p, C)

    # Case 1: ragged HW (18*18 = 324) with forced 128-wide tiles -> multi-step
    # pipelined reduction + in-kernel tail masking (no wrapper-side pad).
    x1 = jax.random.normal(k_x1, (N, C, 18, 18), dtype=jnp.float32)
    check(x1, params, tile_hw=128)

    # Case 2: auto tiling, HW a multiple of 128 -> unmasked fast path.
    x2 = jax.random.normal(k_x2, (N, C, 16, 16), dtype=jnp.float32)
    check(x2, params)

    # Case 3: auto tiling on the ragged shape (single masked 384-wide tile).
    check(x1, params)

    # Case 4: larger channel count + tile_n = N -> non-hoisted (ref-accumulate)
    # path for the running sum/max.
    C2 = 256
    params_big = make_params(k_big, C2)
    x4 = jax.random.normal(jax.random.fold_in(k_big, 7), (N, C2, 16, 16),
                           dtype=jnp.float32)
    check(x4, params_big, tile_n=N)

    print("KERNEL_OK")
</pallas_src>

<mosaic_0001>
module attributes {stable_mosaic.version = 11 : i64} {
  func.func @kernel(%arg0: i32, %arg1: i32, %arg2: memref<1x64x128xf32, #tpu.memory_space<vmem>>, %arg3: memref<64x4xf32, #tpu.memory_space<vmem>>, %arg4: memref<1x4xf32, #tpu.memory_space<vmem>>, %arg5: memref<4x64xf32, #tpu.memory_space<vmem>>, %arg6: memref<1x64xf32, #tpu.memory_space<vmem>>, %arg7: memref<1x1x64xf32, #tpu.memory_space<vmem>>, %arg8: memref<1x64x128xf32, #tpu.memory_space<vmem>>, %arg9: memref<1x64x128xf32, #tpu.memory_space<vmem>>) attributes {dimension_semantics = [#tpu.dimension_semantics<parallel>, #tpu.dimension_semantics<arbitrary>], iteration_bounds = array<i64: 2, 3>, scalar_prefetch = 0 : i64, scratch_operands = 2 : i64, tpu.core_type = #tpu.core_type<tc>, window_params = [{transform_indices = @transform_0, window_bounds = array<i64: 1, 64, 128>}, {pipeline_mode = #tpu.pipeline_mode<synchronous>, transform_indices = @transform_1, window_bounds = array<i64: 64, 4>}, {pipeline_mode = #tpu.pipeline_mode<synchronous>, transform_indices = @transform_2, window_bounds = array<i64: 1, 4>}, {pipeline_mode = #tpu.pipeline_mode<synchronous>, transform_indices = @transform_3, window_bounds = array<i64: 4, 64>}, {pipeline_mode = #tpu.pipeline_mode<synchronous>, transform_indices = @transform_4, window_bounds = array<i64: 1, 64>}, {transform_indices = @transform_5, window_bounds = array<i64: 1, 1, 64>}]} {
    %c0_i32 = arith.constant 0 : i32
    %0 = arith.cmpi eq, %arg1, %c0_i32 : i32
    %1 = arith.extui %0 : i1 to i32
    %c0_i32_0 = arith.constant 0 : i32
    %2 = arith.cmpi ne, %1, %c0_i32_0 : i32
    scf.if %2 {
      %cst = arith.constant 0.000000e+00 : f32
      %12 = vector.broadcast %cst : f32 to vector<1x64x128xf32>
      %c0 = arith.constant 0 : index
      %c0_6 = arith.constant 0 : index
      %c0_7 = arith.constant 0 : index
      %13 = vector.load %arg8[%c0, %c0_6, %c0_7] : memref<1x64x128xf32, #tpu.memory_space<vmem>>, vector<1x64x128xf32>
      tpu.vector_store %arg8[%c0, %c0_6, %c0_7], %12 {strides = array<i32>} : memref<1x64x128xf32, #tpu.memory_space<vmem>>, vector<1x64x128xf32>,
      %cst_8 = arith.constant 0xFF800000 : f32
      %14 = vector.broadcast %cst_8 : f32 to vector<1x64x128xf32>
      %c0_9 = arith.constant 0 : index
      %c0_10 = arith.constant 0 : index
      %c0_11 = arith.constant 0 : index
      %15 = vector.load %arg9[%c0_9, %c0_10, %c0_11] : memref<1x64x128xf32, #tpu.memory_space<vmem>>, vector<1x64x128xf32>
      tpu.vector_store %arg9[%c0_9, %c0_10, %c0_11], %14 {strides = array<i32>} : memref<1x64x128xf32, #tpu.memory_space<vmem>>, vector<1x64x128xf32>,
    } else {
    }
    %c2_i32 = arith.constant 2 : i32
    %3 = arith.cmpi slt, %arg1, %c2_i32 : i32
    %4 = arith.extui %3 : i1 to i32
    %c0_i32_1 = arith.constant 0 : i32
    %5 = arith.cmpi ne, %4, %c0_i32_1 : i32
    scf.if %5 {
      %c0 = arith.constant 0 : index
      %c0_6 = arith.constant 0 : index
      %c0_7 = arith.constant 0 : index
      %12 = vector.load %arg8[%c0, %c0_6, %c0_7] : memref<1x64x128xf32, #tpu.memory_space<vmem>>, vector<1x64x128xf32>
      %c0_8 = arith.constant 0 : index
      %c0_9 = arith.constant 0 : index
      %c0_10 = arith.constant 0 : index
      %13 = vector.load %arg9[%c0_8, %c0_9, %c0_10] : memref<1x64x128xf32, #tpu.memory_space<vmem>>, vector<1x64x128xf32>
      %c0_i32_11 = arith.constant 0 : i32
      %c128_i32 = arith.constant 128 : i32
      %14 = arith.muli %c0_i32_11, %c128_i32 : i32
      %15 = tpu.assume_multiple %14, 128 : i32
      %c0_12 = arith.constant 0 : index
      %c0_13 = arith.constant 0 : index
      %16 = arith.index_cast %15 : i32 to index
      %17 = vector.load %arg2[%c0_12, %c0_13, %16] : memref<1x64x128xf32, #tpu.memory_space<vmem>>, vector<1x64x128xf32>
      %18 = arith.addf %12, %17 : vector<1x64x128xf32>
      %19 = arith.maximumf %13, %17 : vector<1x64x128xf32>
      %c1_i32 = arith.constant 1 : i32
      %c0_14 = arith.constant 0 : index
      %c0_15 = arith.constant 0 : index
      %c0_16 = arith.constant 0 : index
      %20 = vector.load %arg8[%c0_14, %c0_15, %c0_16] : memref<1x64x128xf32, #tpu.memory_space<vmem>>, vector<1x64x128xf32>
      tpu.vector_store %arg8[%c0_14, %c0_15, %c0_16], %18 {strides = array<i32>} : memref<1x64x128xf32, #tpu.memory_space<vmem>>, vector<1x64x128xf32>,
      %c0_17 = arith.constant 0 : index
      %c0_18 = arith.constant 0 : index
      %c0_19 = arith.constant 0 : index
      %21 = vector.load %arg9[%c0_17, %c0_18, %c0_19] : memref<1x64x128xf32, #tpu.memory_space<vmem>>, vector<1x64x128xf32>
      tpu.vector_store %arg9[%c0_17, %c0_18, %c0_19], %19 {strides = array<i32>} : memref<1x64x128xf32, #tpu.memory_space<vmem>>, vector<1x64x128xf32>,
    } else {
    }
    %c2_i32_2 = arith.constant 2 : i32
    %6 = arith.cmpi eq, %arg1, %c2_i32_2 : i32
    %7 = arith.extui %6 : i1 to i32
    %c0_i32_3 = arith.constant 0 : i32
    %8 = arith.cmpi ne, %7, %c0_i32_3 : i32
    scf.if %8 {
      %c128_i32 = arith.constant 128 : i32
      %12 = arith.muli %arg1, %c128_i32 : i32
      %13 = tpu.iota {dimensions = array<i32: 2>} : vector<1x1x128xi32>
      %14 = vector.broadcast %12 : i32 to vector<1x1x128xi32>
      %15 = arith.addi %14, %13 : vector<1x1x128xi32>
      %c0 = arith.constant 0 : index
      %c0_6 = arith.constant 0 : index
      %c0_7 = arith.constant 0 : index
      %16 = vector.load %arg8[%c0, %c0_6, %c0_7] : memref<1x64x128xf32, #tpu.memory_space<vmem>>, vector<1x64x128xf32>
      %c0_8 = arith.constant 0 : index
      %c0_9 = arith.constant 0 : index
      %c0_10 = arith.constant 0 : index
      %17 = vector.load %arg9[%c0_8, %c0_9, %c0_10] : memref<1x64x128xf32, #tpu.memory_space<vmem>>, vector<1x64x128xf32>
      %c0_i32_11 = arith.constant 0 : i32
      %c128_i32_12 = arith.constant 128 : i32
      %18 = arith.muli %c0_i32_11, %c128_i32_12 : i32
      %19 = tpu.assume_multiple %18, 128 : i32
      %c0_13 = arith.constant 0 : index
      %c0_14 = arith.constant 0 : index
      %20 = arith.index_cast %19 : i32 to index
      %21 = vector.load %arg2[%c0_13, %c0_14, %20] : memref<1x64x128xf32, #tpu.memory_space<vmem>>, vector<1x64x128xf32>
      %c128_i32_15 = arith.constant 128 : i32
      %22 = arith.muli %c0_i32_11, %c128_i32_15 : i32
      %23 = vector.broadcast %22 : i32 to vector<1x1x128xi32>
      %24 = arith.addi %15, %23 : vector<1x1x128xi32>
      %c324_i32 = arith.constant 324 : i32
      %25 = vector.broadcast %c324_i32 : i32 to vector<1x1x128xi32>
      %26 = arith.cmpi slt, %24, %25 : vector<1x1x128xi32>
      %cst = arith.constant 0.000000e+00 : f32
      %27 = vector.shape_cast %26 : vector<1x1x128xi1> to vector<1x1x128xi1>
      %28 = vector.broadcast %27 : vector<1x1x128xi1> to vector<1x64x128xi1>
      %29 = vector.broadcast %cst : f32 to vector<1x64x128xf32>
      %30 = arith.select %28, %21, %29 : vector<1x64x128xi1>, vector<1x64x128xf32>
      %cst_16 = arith.constant 0xFF800000 : f32
      %31 = vector.shape_cast %26 : vector<1x1x128xi1> to vector<1x1x128xi1>
      %32 = vector.broadcast %31 : vector<1x1x128xi1> to vector<1x64x128xi1>
      %33 = vector.broadcast %cst_16 : f32 to vector<1x64x128xf32>
      %34 = arith.select %32, %21, %33 : vector<1x64x128xi1>, vector<1x64x128xf32>
      %35 = arith.addf %16, %30 : vector<1x64x128xf32>
      %36 = arith.maximumf %17, %34 : vector<1x64x128xf32>
      %c1_i32 = arith.constant 1 : i32
      %c0_17 = arith.constant 0 : index
      %c0_18 = arith.constant 0 : index
      %c0_19 = arith.constant 0 : index
      %37 = vector.load %arg8[%c0_17, %c0_18, %c0_19] : memref<1x64x128xf32, #tpu.memory_space<vmem>>, vector<1x64x128xf32>
      tpu.vector_store %arg8[%c0_17, %c0_18, %c0_19], %35 {strides = array<i32>} : memref<1x64x128xf32, #tpu.memory_space<vmem>>, vector<1x64x128xf32>,
      %c0_20 = arith.constant 0 : index
      %c0_21 = arith.constant 0 : index
      %c0_22 = arith.constant 0 : index
      %38 = vector.load %arg9[%c0_20, %c0_21, %c0_22] : memref<1x64x128xf32, #tpu.memory_space<vmem>>, vector<1x64x128xf32>
      tpu.vector_store %arg9[%c0_20, %c0_21, %c0_22], %36 {strides = array<i32>} : memref<1x64x128xf32, #tpu.memory_space<vmem>>, vector<1x64x128xf32>,
    } else {
    }
    %c2_i32_4 = arith.constant 2 : i32
    %9 = arith.cmpi eq, %arg1, %c2_i32_4 : i32
    %10 = arith.extui %9 : i1 to i32
    %c0_i32_5 = arith.constant 0 : i32
    %11 = arith.cmpi ne, %10, %c0_i32_5 : i32
    scf.if %11 {
      %c0 = arith.constant 0 : index
      %c0_6 = arith.constant 0 : index
      %c0_7 = arith.constant 0 : index
      %12 = vector.load %arg8[%c0, %c0_6, %c0_7] : memref<1x64x128xf32, #tpu.memory_space<vmem>>, vector<1x64x128xf32>
      %cst = arith.constant dense<0.000000e+00> : vector<1x64xf32>
      %13 = vector.multi_reduction <add>, %12, %cst [2] : vector<1x64x128xf32> to vector<1x64xf32>
      %cst_8 = arith.constant 0.00308641978 : f32
      %14 = vector.broadcast %cst_8 : f32 to vector<1x64xf32>
      %15 = arith.mulf %13, %14 : vector<1x64xf32>
      %c0_9 = arith.constant 0 : index
      %c0_10 = arith.constant 0 : index
      %c0_11 = arith.constant 0 : index
      %16 = vector.load %arg9[%c0_9, %c0_10, %c0_11] : memref<1x64x128xf32, #tpu.memory_space<vmem>>, vector<1x64x128xf32>
      %cst_12 = arith.constant dense<0xFF800000> : vector<1x64xf32>
      %17 = vector.multi_reduction <maximumf>, %16, %cst_12 [2] : vector<1x64x128xf32> to vector<1x64xf32>
      %c0_13 = arith.constant 0 : index
      %c0_14 = arith.constant 0 : index
      %18 = vector.load %arg3[%c0_13, %c0_14] : memref<64x4xf32, #tpu.memory_space<vmem>>, vector<64x4xf32>
      %c0_15 = arith.constant 0 : index
      %c0_16 = arith.constant 0 : index
      %19 = vector.load %arg4[%c0_15, %c0_16] : memref<1x4xf32, #tpu.memory_space<vmem>>, vector<1x4xf32>
      %cst_17 = arith.constant dense<0.000000e+00> : vector<1x4xf32>
      %20 = tpu.matmul %15, %18, %cst_17 {dimension_numbers = #tpu.dot_dimension_numbers<[1], [0], [0], [1], [0, 0, 1, 1], [], []>} : vector<1x64xf32>, vector<64x4xf32>, vector<1x4xf32> -> vector<1x4xf32>
      %21 = arith.addf %20, %19 : vector<1x4xf32>
      %cst_18 = arith.constant 0.000000e+00 : f32
      %22 = vector.broadcast %cst_18 : f32 to vector<1x4xf32>
      %23 = arith.maximumf %21, %22 : vector<1x4xf32>
      %cst_19 = arith.constant dense<0.000000e+00> : vector<1x4xf32>
      %24 = tpu.matmul %17, %18, %cst_19 {dimension_numbers = #tpu.dot_dimension_numbers<[1], [0], [0], [1], [0, 0, 1, 1], [], []>} : vector<1x64xf32>, vector<64x4xf32>, vector<1x4xf32> -> vector<1x4xf32>
      %25 = arith.addf %24, %19 : vector<1x4xf32>
      %cst_20 = arith.constant 0.000000e+00 : f32
      %26 = vector.broadcast %cst_20 : f32 to vector<1x4xf32>
      %27 = arith.maximumf %25, %26 : vector<1x4xf32>
      %28 = arith.addf %23, %27 : vector<1x4xf32>
      %c0_21 = arith.constant 0 : index
      %c0_22 = arith.constant 0 : index
      %29 = vector.load %arg5[%c0_21, %c0_22] : memref<4x64xf32, #tpu.memory_space<vmem>>, vector<4x64xf32>
      %cst_23 = arith.constant dense<0.000000e+00> : vector<1x64xf32>
      %30 = tpu.matmul %28, %29, %cst_23 {dimension_numbers = #tpu.dot_dimension_numbers<[1], [0], [0], [1], [0, 0, 1, 1], [], []>} : vector<1x4xf32>, vector<4x64xf32>, vector<1x64xf32> -> vector<1x64xf32>
      %c0_24 = arith.constant 0 : index
      %c0_25 = arith.constant 0 : index
      %31 = vector.load %arg6[%c0_24, %c0_25] : memref<1x64xf32, #tpu.memory_space<vmem>>, vector<1x64xf32>
      %cst_26 = arith.constant 2.000000e+00 : f32
      %32 = vector.broadcast %cst_26 : f32 to vector<1x64xf32>
      %33 = arith.mulf %32, %31 : vector<1x64xf32>
      %34 = arith.addf %30, %33 : vector<1x64xf32>
      %35 = arith.negf %34 : vector<1x64xf32>
      %36 = math.exp %35 : vector<1x64xf32>
      %cst_27 = arith.constant 1.000000e+00 : f32
      %37 = vector.broadcast %cst_27 : f32 to vector<1x64xf32>
      %38 = arith.addf %37, %36 : vector<1x64xf32>
      %39 = arith.divf %37, %38 : vector<1x64xf32>
      %40 = vector.shape_cast %39 : vector<1x64xf32> to vector<1x1x64xf32>
      %c0_28 = arith.constant 0 : index
      %c0_29 = arith.constant 0 : index
      %c0_30 = arith.constant 0 : index
      %41 = vector.load %arg7[%c0_28, %c0_29, %c0_30] : memref<1x1x64xf32, #tpu.memory_space<vmem>>, vector<1x1x64xf32>
      tpu.vector_store %arg7[%c0_28, %c0_29, %c0_30], %40 {strides = array<i32>} : memref<1x1x64xf32, #tpu.memory_space<vmem>>, vector<1x1x64xf32>,
    } else {
    }
    return
  }
  func.func @transform_0(%arg0: i32, %arg1: i32) -> (i32, i32, i32) {
    %c0_i32 = arith.constant 0 : i32
    %c0_i32_0 = arith.constant 0 : i32
    return %arg0, %c0_i32, %arg1 : i32, i32, i32
  }
  func.func @transform_1(%arg0: i32, %arg1: i32) -> (i32, i32) {
    %c0_i32 = arith.constant 0 : i32
    %c0_i32_0 = arith.constant 0 : i32
    %c0_i32_1 = arith.constant 0 : i32
    return %c0_i32, %c0_i32_0 : i32, i32
  }
  func.func @transform_2(%arg0: i32, %arg1: i32) -> (i32, i32) {
    %c0_i32 = arith.constant 0 : i32
    %c0_i32_0 = arith.constant 0 : i32
    %c0_i32_1 = arith.constant 0 : i32
    return %c0_i32, %c0_i32_0 : i32, i32
  }
  func.func @transform_3(%arg0: i32, %arg1: i32) -> (i32, i32) {
    %c0_i32 = arith.constant 0 : i32
    %c0_i32_0 = arith.constant 0 : i32
    %c0_i32_1 = arith.constant 0 : i32
    return %c0_i32, %c0_i32_0 : i32, i32
  }
  func.func @transform_4(%arg0: i32, %arg1: i32) -> (i32, i32) {
    %c0_i32 = arith.constant 0 : i32
    %c0_i32_0 = arith.constant 0 : i32
    %c0_i32_1 = arith.constant 0 : i32
    return %c0_i32, %c0_i32_0 : i32, i32
  }
  func.func @transform_5(%arg0: i32, %arg1: i32) -> (i32, i32, i32) {
    %c0_i32 = arith.constant 0 : i32
    %c0_i32_0 = arith.constant 0 : i32
    %c0_i32_1 = arith.constant 0 : i32
    return %arg0, %c0_i32, %c0_i32_0 : i32, i32, i32
  }
}

</mosaic_0001>

<bundles_post_ra>
// kernel: tpu_custom_call.1
= control target key start
LH: loop header
LB: loop body
LE: loop exit
PB: predicated region body
PF: predicated region fallthrough
CT: control target
= control target key end

     0   :  { %10 = vsyncpa [#allocation5], 0  ;;  %s1718_s0 = inlined_call_operand.hbm [shape: f32[2,64,324], index: 0, kind: input, shape index: {}]   ;;  %s1719_s1 = inlined_call_operand.vmem [shape: f32[64,4], index: 1, kind: input, shape index: {}]   ;;  %s1720_s2 = inlined_call_operand.vmem [shape: f32[1,4], index: 2, kind: input, shape index: {}]   ;;  %s1721_s3 = inlined_call_operand.vmem [shape: f32[4,64], index: 3, kind: input, shape index: {}]   ;;  %s1722_s4 = inlined_call_operand.vmem [shape: f32[1,64], index: 4, kind: input, shape index: {}]   ;;  %s1723_s5 = inlined_call_operand.hbm [shape: f32[2,1,64], index: 5, kind: output, shape index: {}]  }
   0x1   :  { %12 = vsyncpa [#allocation5 + $0x1], 0 }
   0x2   :  { %13 = vsyncpa [#allocation6], 0 }
   0x3   :  { %15 = vsyncpa [#allocation6 + $0x1], 0  ;;  %s1339_s18 = smov 0   ;;  %s1341_s19 = smov 0  }
   0x4   :  { %s1343_s20 = smov 0   ;;  %s1345_s21 = smov 0  }
   0x5   :  { %s1347_s22 = smov 0   ;;  %s1349_s23 = smov 0  }
   0x6   :  { %s1351_s24 = smov 0   ;;  %s1353_s25 = smov 0  }
   0x7   :  { %s1355_s26 = smov 0   ;;  %s1357_s27 = smov 0  }
   0x8   :  { %s1359_s28 = smov 0  }
   0x9 LB: > { %s923_s29 = sadd.s32 4294967295, %s1297_s28   ;;  %s924_s30 = sadd.s32 4294967294, %s1297_s28   ;;  %s1297_s28 = sphi %s1359_s28, %s21_s28   ;;  %s1293_s27 = sphi %s1357_s27, %s1751_s27   ;;  %s1289_s26 = sphi %s1355_s26, %s1750_s26   ;;  %s1285_s25 = sphi %s1353_s25, %s1749_s25   ;;  %s1281_s24 = sphi %s1351_s24, %s1748_s24   ;;  %s1277_s23 = sphi %s1349_s23, %s1747_s23   ;;  %s1273_s22 = sphi %s1347_s22, %s1746_s22   ;;  %s1269_s21 = sphi %s1345_s21, %s1745_s21   ;;  %s1265_s20 = sphi %s1343_s20, %s1744_s20   ;;  %s1261_s19 = sphi %s1341_s19, %s1743_s19   ;;  %s1257_s18 = sphi %s1339_s18, %s1742_s18  }
   0xa   : > { %s30_s6 = sadd.s32 1, %s1289_s26  ;;  %s33_s7 = sadd.s32 1, %s1293_s27 }
   0xb   : > { %p31_p0 = scmp.ge.s32.totalorder %s30_s6, 3  ;;  %s42_s8 = sadd.s32 1, %s1277_s23 }
   0xc   : > { %p49_p1 = scmp.ne.s32.totalorder %s1277_s23, %s1273_s22  ;;  %p50_p2 = scmp.eq.s32.totalorder %s1297_s28, 0 }
   0xd   : > { %s1753_s6 = smov (%p31_p0, %s30_s6), 0  ;;  %s1755_s7 = smov (!%p31_p0, %s33_s7), %s1293_s27 }
   0xe   : > { %1727 = sst [smem:[#allocation10_spill]] %s1753_s6  ;;  %s38_s9 = ssub.s32 %s1289_s26, %s1753_s6 }
   0xf   : > { %p1405_p3 = por %p50_p2, %p49_p1  ;;  %p35_p4 = scmp.ge.s32.totalorder %s1755_s7, 2 }
  0x10   : > { %p55_p5 = scmp.ne.s32.totalorder %s1273_s22, %s1269_s21  ;;  %p56_p6 = scmp.eq.s32.totalorder %s923_s29, 0 }
  0x11   : > { %s152_s11 = sadd.s32 1, %s1265_s20  ;;  %s1757_s7 = smov (%p35_p4, %s1755_s7), 0 }
  0x12   : > { %1729 = sst [smem:[#allocation11_spill]] %s1757_s7  ;;  %p1413_p7 = por %p56_p6, %p55_p5 }
  0x13   : > { %p162_p8 = scmp.ne.s32.totalorder %s1265_s20, %s1261_s19  ;;  %s37_s13 = ssub.s32 %s1293_s27, %s1757_s7 }
  0x14   : > { %p163_p9 = scmp.eq.s32.totalorder %s923_s29, 5  ;;  %s39_s14 = sor.u32 %s38_s9, %s37_s13 }
  0x15   : > { %p150_p10 = scmp.eq.s32.totalorder %s37_s13, 0  ;;  %p40_p11 = scmp.eq.s32.totalorder %s39_s14, 0 }
  0x16   : > { %p1421_p12 = por %p163_p9, %p162_p8  ;;  %p168_p13 = scmp.ne.s32.totalorder %s1261_s19, %s1257_s18 }
  0x17   : > { %s1426_s16 = scalar_select %p150_p10, %s1265_s20, %s152_s11  }
  0x18   : > { %s1731_s15 = scalar_select %p1421_p12, 1, 0 }
  0x19   : > { %1732 = sst [smem:[#allocation12_spill]] %s1426_s16  ;;  %p169_p0 = scmp.eq.s32.totalorder %s924_s30, 5 }
  0x1a   : > { %s1429_s17 = scalar_select %p40_p11, %s1277_s23, %s42_s8  }
  0x1b   : > { %p1043_p1 = scmp.lt.s32.totalorder %s1297_s28, 6  ;;  %p1434_p2 = por %p169_p0, %p168_p13 }
  0x1c   : > { %1733 = sst [smem:[#allocation13_spill]] %s1429_s17  ;;  %s201_s29 = sand.u32 1, %s1277_s23  }
  0x1d   : > { %s1734_s21 = scalar_select %p1434_p2, 1, 0 }
  0x1e   : > { %s927_s9 = sshll.u32 %s201_s29, 6  ;;  %s1030_s7 = smul.u32 24, %s1293_s27 }
  0x1f   : > { %s205_s13 = scalar_lea.vmem [#allocation4], %s927_s9  ;;  %p1442_p4 = pnand %p1043_p1, %p1405_p3 }
  0x20   : > { %s213_s14 = sshll.u32 %s205_s13, 4  ;;  %s210_s8 = sadd.s32 %s1289_s26, %s1030_s7  ;;  %s1447_s14 = int_to_ptr.vmem [resolvable:$true] %s213_s14 }
  0x21   : > { %s928_s30 = sshll.u32 %s210_s8, 7  ;;  %s1454_s10 = scalar_lea.sflag [#allocation5], %s201_s29 }
  0x22   : > { %s1452_s16 = scalar_lea.hbm %s1718_s0, %s928_s30  ;;  %p1147_p5 = pneg %p1442_p4 }
  0x23   : > { %s1145_s9 = scalar_lea.hbm %s1452_s16, 1024  ;;  %s1150_s17 = scalar_lea.hbm %s1718_s0, 6144 }
  0x24   : > { %p1146_p3 = scmp.ne.s32.totalorder %s1452_s16, %s1145_s9  ;;  %p1151_p9 = scmp.lt.u32.totalorder %s1452_s16, %s1718_s0 }
  0x25   : > { %p1152_p10 = scmp.lt.u32.totalorder %s1150_s17, %s1145_s9  ;;  %p1154_p13 = scmp.lt.u32.totalorder %s1145_s9, %s1452_s16 }
  0x26   : > { %p1148_p6 = pnand %p1147_p5, %p1146_p3 }
  0x27   : > { %p1153_p11 = por %p1152_p10, %p1151_p9 }
  0x28   : > { %p1149_p8 = pneg %p1148_p6 }
  0x29   : > { %p1155_p0 = por %p1154_p13, %p1153_p11 }
  0x2b   : > { %p1156_p1 = pnand %p1155_p0, %p1149_p8 }
  0x2d   : > { %1159 = shalt.err (!%p1156_p1)
}
  0x2e   : > { %s1160_s29 = scalar_lea.vmem %s1447_s14, 1024  ;;  %s1299_s11 = smov [#allocation4]  }
  0x2f   : > { %p1161_p3 = scmp.ne.s32.totalorder %s1447_s14, %s1160_s29  ;;  %s1165_s7 = sshll.u32 %s1299_s11, 4  ;;  %s1166_s7 = int_to_ptr.vmem [resolvable:$false] %s1165_s7 }
  0x30   : > { %s1167_s13 = scalar_lea.vmem %s1166_s7, 2048  ;;  %p1168_p12 = scmp.lt.s32.totalorder %s1447_s14, %s1166_s7 }
  0x31   : > { %p1163_p6 = pnand %p1161_p3, %p1147_p5  ;;  %p1169_p9 = scmp.lt.s32.totalorder %s1167_s13, %s1160_s29 }
  0x33   : > { %p1164_p2 = pneg %p1163_p6  ;;  %p1170_p10 = por %p1169_p9, %p1168_p12 }
  0x35   : > { %p1171_p11 = pnand %p1170_p10, %p1164_p2 }
  0x37   : > { %1174 = shalt.err (!%p1171_p11)
}
  0x38   : > { %s1300_s9 = smov 384   ;;  %s1301_s17 = smov 128  }
  0x39   : > { %s1302_s8 = smov 8   ;;  %p929_p5 = scmp.ge.s32.totalorder %s1297_s28, 1 }
  0x3a   : > { %1038 = dma.hbm_to_vmem [thread:$0]  (!%p1442_p4), %s1452_s16, 1024, %s1447_s14, %s1454_s10, %s1300_s9, %s1301_s17, %s1302_s8  }
  0x3b   : > { %p221_p8 = scmp.lt.s32.totalorder %s1297_s28, 7 }
  0x3d   : > { %p222_p13 = pnand %p929_p5, %p221_p8 }
  0x3e   : > { %s227_s30 = sand.u32 (!%p222_p13), 1, %s1273_s22  }
  0x3f   : > { %225 = sbr.rel (%p222_p13) target bundleno = 764 (0x2fc), region = 40  ;;  %s930_s29 = sshll.u32 (!%p222_p13), %s227_s30, 6 }
  0x40   : > { %s228_s11 = scalar_lea.sflag (!%p222_p13), [#allocation5], %s227_s30  ;;  %s1485_s7 = scalar_lea.vmem (!%p222_p13), [#allocation4], %s930_s29 }
  0x46   : > { %1248 = dma.done.wait (%p1413_p7), %s228_s11, 1024  }
  0x47   : > { %1250 = vsyncadd (%p1413_p7), %s228_s11, 4294966272  ;;  %s255_s6 = sand.u32 1, %s1261_s19   ;;  %p931_p12 = scmp.ne.s32.totalorder %s1281_s24, 0 }
  0x48   : > { %s1494_s16 = scalar_lea.vmem [#allocation7], %s255_s6  ;;  %v1303_v0 = vmov (!%p931_p12), 0.0   ;;  %v1304_v1 = vmov (!%p931_p12), -inf  }
  0x49   : > { %260 = sbr.rel (%p931_p12) target bundleno = 81 (0x51), region = 48  ;;  %261 = vst [vmem:[#allocation2] sm:$0xff] (!%p931_p12), %v1303_v0  ;;  %262 = vst [vmem:[#allocation2 + $0x8] sm:$0xff] (!%p931_p12), %v1303_v0 }
  0x4a   : > { %263 = vst [vmem:[#allocation2 + $0x10] sm:$0xff] (!%p931_p12), %v1303_v0  ;;  %264 = vst [vmem:[#allocation2 + $0x18] sm:$0xff] (!%p931_p12), %v1303_v0 }
  0x4b   : > { %265 = vst [vmem:[#allocation2 + $0x20] sm:$0xff] (!%p931_p12), %v1303_v0  ;;  %266 = vst [vmem:[#allocation2 + $0x28] sm:$0xff] (!%p931_p12), %v1303_v0 }
  0x4c   : > { %267 = vst [vmem:[#allocation2 + $0x30] sm:$0xff] (!%p931_p12), %v1303_v0  ;;  %268 = vst [vmem:[#allocation2 + $0x38] sm:$0xff] (!%p931_p12), %v1303_v0 }
  0x4d   : > { %269 = vst [vmem:[#allocation3] sm:$0xff] (!%p931_p12), %v1304_v1  ;;  %270 = vst [vmem:[#allocation3 + $0x8] sm:$0xff] (!%p931_p12), %v1304_v1 }
  0x4e   : > { %271 = vst [vmem:[#allocation3 + $0x10] sm:$0xff] (!%p931_p12), %v1304_v1  ;;  %272 = vst [vmem:[#allocation3 + $0x18] sm:$0xff] (!%p931_p12), %v1304_v1 }
  0x4f   : > { %273 = vst [vmem:[#allocation3 + $0x20] sm:$0xff] (!%p931_p12), %v1304_v1  ;;  %274 = vst [vmem:[#allocation3 + $0x28] sm:$0xff] (!%p931_p12), %v1304_v1 }
  0x50   : > { %275 = vst [vmem:[#allocation3 + $0x30] sm:$0xff] %v1304_v1  ;;  %276 = vst [vmem:[#allocation3 + $0x38] sm:$0xff] %v1304_v1 }
  0x51 PF: > { %p932_p7 = scmp.ge.s32.totalorder %s1281_s24, 2 }
  0x52   : > { %v281_v2 = vld [vmem:[#allocation2] sm:$0xff] (!%p932_p7)  ;;  %v282_v4 = vld [vmem:[#allocation2 + $0x8] sm:$0xff] (!%p932_p7)  ;;  %v283_v7 = vld [vmem:[#allocation2 + $0x10] sm:$0xff] (!%p932_p7) }
  0x53   : > { %280 = sbr.rel (%p932_p7) target bundleno = 95 (0x5f), region = 52  ;;  %v297_v3 = vld [vmem:[%s1485_s7] sm:$0xff] (!%p932_p7)  ;;  %v298_v6 = vld [vmem:[%s1485_s7 + $0x8] sm:$0xff] (!%p932_p7)  ;;  %v299_v8 = vld [vmem:[%s1485_s7 + $0x10] sm:$0xff] (!%p932_p7) }
  0x54   : > { %v305_v5 = vadd.f32 (!%p932_p7), %v297_v3, %v281_v2  ;;  %v306_v9 = vadd.f32 (!%p932_p7), %v298_v6, %v282_v4  ;;  %v307_v10 = vadd.f32 (!%p932_p7), %v299_v8, %v283_v7  ;;  %v284_v11 = vld [vmem:[#allocation2 + $0x18] sm:$0xff] (!%p932_p7)  ;;  %v285_v13 = vld [vmem:[#allocation2 + $0x20] sm:$0xff] (!%p932_p7)  ;;  %v286_v16 = vld [vmem:[#allocation2 + $0x28] sm:$0xff] (!%p932_p7) }
  0x55   : > { %v300_v12 = vld [vmem:[%s1485_s7 + $0x18] sm:$0xff] (!%p932_p7)  ;;  %v301_v15 = vld [vmem:[%s1485_s7 + $0x20] sm:$0xff] (!%p932_p7)  ;;  %v302_v17 = vld [vmem:[%s1485_s7 + $0x28] sm:$0xff] (!%p932_p7) }
  0x56   : > { %321 = vst [vmem:[#allocation2] sm:$0xff] (!%p932_p7), %v305_v5  ;;  %v308_v14 = vadd.f32 (!%p932_p7), %v300_v12, %v284_v11  ;;  %322 = vst [vmem:[#allocation2 + $0x8] sm:$0xff] (!%p932_p7), %v306_v9  ;;  %v309_v18 = vadd.f32 (!%p932_p7), %v301_v15, %v285_v13  ;;  %v310_v19 = vadd.f32 (!%p932_p7), %v302_v17, %v286_v16  ;;  %v287_v20 = vld [vmem:[#allocation2 + $0x30] sm:$0xff] (!%p932_p7)  ;;  %v288_v22 = vld [vmem:[#allocation2 + $0x38] sm:$0xff] (!%p932_p7) }
  0x57   : > { %323 = vst [vmem:[#allocation2 + $0x10] sm:$0xff] (!%p932_p7), %v307_v10  ;;  %v303_v21 = vld [vmem:[%s1485_s7 + $0x30] sm:$0xff] (!%p932_p7)  ;;  %v304_v24 = vld [vmem:[%s1485_s7 + $0x38] sm:$0xff] (!%p932_p7)  ;;  %v289_v25 = vld [vmem:[#allocation3] sm:$0xff] (!%p932_p7) }
  0x58   : > { %324 = vst [vmem:[#allocation2 + $0x18] sm:$0xff] (!%p932_p7), %v308_v14  ;;  %v311_v23 = vadd.f32 (!%p932_p7), %v303_v21, %v287_v20  ;;  %v290_v26 = vld [vmem:[#allocation3 + $0x8] sm:$0xff] (!%p932_p7)  ;;  %325 = vst [vmem:[#allocation2 + $0x20] sm:$0xff] (!%p932_p7), %v309_v18  ;;  %v312_v27 = vadd.f32 (!%p932_p7), %v304_v24, %v288_v22  ;;  %v313_v28 = vmax.f32 (!%p932_p7), %v289_v25, %v297_v3  ;;  %v291_v30 = vld [vmem:[#allocation3 + $0x10] sm:$0xff] (!%p932_p7) }
  0x59   : > { %326 = vst [vmem:[#allocation2 + $0x28] sm:$0xff] (!%p932_p7), %v310_v19  ;;  %v314_v29 = vmax.f32 (!%p932_p7), %v290_v26, %v298_v6  ;;  %v292_v31 = vld [vmem:[#allocation3 + $0x18] sm:$0xff] (!%p932_p7)  ;;  %v293_v32 = vld [vmem:[#allocation3 + $0x20] sm:$0xff] (!%p932_p7)  ;;  %v315_v33 = vmax.f32 (!%p932_p7), %v291_v30, %v299_v8  ;;  %v294_v36 = vld [vmem:[#allocation3 + $0x28] sm:$0xff] (!%p932_p7) }
  0x5a   : > { %327 = vst [vmem:[#allocation2 + $0x30] sm:$0xff] %v311_v23  ;;  %v316_v34 = vmax.f32 %v292_v31, %v300_v12  ;;  %v317_v35 = vmax.f32 %v293_v32, %v301_v15  ;;  %v295_v37 = vld [vmem:[#allocation3 + $0x30] sm:$0xff]  ;;  %v296_v38 = vld [vmem:[#allocation3 + $0x38] sm:$0xff]  ;;  %328 = vst [vmem:[#allocation2 + $0x38] sm:$0xff] %v312_v27  ;;  %v318_v39 = vmax.f32 %v294_v36, %v302_v17 }
  0x5b   : > { %329 = vst [vmem:[#allocation3] sm:$0xff] %v313_v28  ;;  %330 = vst [vmem:[#allocation3 + $0x8] sm:$0xff] %v314_v29  ;;  %v319_v40 = vmax.f32 %v295_v37, %v303_v21  ;;  %v320_v41 = vmax.f32 %v296_v38, %v304_v24 }
  0x5c   : > { %331 = vst [vmem:[#allocation3 + $0x10] sm:$0xff] %v315_v33  ;;  %332 = vst [vmem:[#allocation3 + $0x18] sm:$0xff] %v316_v34 }
  0x5d   : > { %333 = vst [vmem:[#allocation3 + $0x20] sm:$0xff] %v317_v35  ;;  %334 = vst [vmem:[#allocation3 + $0x28] sm:$0xff] %v318_v39 }
  0x5e   : > { %335 = vst [vmem:[#allocation3 + $0x30] sm:$0xff] %v319_v40  ;;  %336 = vst [vmem:[#allocation3 + $0x38] sm:$0xff] %v320_v41 }
  0x5f PF: > { %p933_p2 = scmp.ne.s32.totalorder %s1281_s24, 2 }
  0x60   : > { %s934_s12 = sshll.u32 (!%p933_p2), %s1281_s24, 7  ;;  %v342_v42 = vlaneseq (!%p933_p2)  ;;  %v364_v47 = vld [vmem:[%s1485_s7 + $0x10] sm:$0xff] (!%p933_p2)  ;;  %v362_v49 = vld [vmem:[%s1485_s7] sm:$0xff] (!%p933_p2)  ;;  %v365_v50 = vld [vmem:[%s1485_s7 + $0x18] sm:$0xff] (!%p933_p2)  ;;  %vm1306_vm1 = vmmov (!%p933_p2), 0   ;;  %vm503_vm2 = vcmask (!%p933_p2), 130112  }
  0x61   : > { %340 = sbr.rel (%p933_p2) target bundleno = 739 (0x2e3), region = 56  ;;  %v344_v43 = vstv (!%p933_p2), %s934_s12  ;;  %v363_v51 = vld [vmem:[%s1485_s7 + $0x8] sm:$0xff] (!%p933_p2)  ;;  %v366_v58 = vld [vmem:[%s1485_s7 + $0x20] sm:$0xff] (!%p933_p2)  ;;  %v368_v14 = vld [vmem:[%s1485_s7 + $0x30] sm:$0xff] (!%p933_p2)  ;;  %vm510_vm3 = vcmask (!%p933_p2), 195712   ;;  %vm517_vm4 = vcmask (!%p933_p2), 261312  }
  0x62   : > { %v1508_v44 = vand.u32 (!%p933_p2), 127, %v342_v42  ;;  %v1510_v45 = vshrl.u32 (!%p933_p2), %v342_v42, 7  ;;  %v346_v53 = vld [vmem:[#allocation2] sm:$0xff] (!%p933_p2)  ;;  %v347_v55 = vld [vmem:[#allocation2 + $0x8] sm:$0xff] (!%p933_p2)  ;;  %v369_v21 = vld [vmem:[%s1485_s7 + $0x38] sm:$0xff] (!%p933_p2)  ;;  %vm524_vm5 = vcmask (!%p933_p2), 326912  }
  0x63   : > { %v348_v46 = vld [vmem:[#allocation2 + $0x10] sm:$0xff] (!%p933_p2)  ;;  %v355_v56 = vld [vmem:[#allocation3 + $0x8] sm:$0xff] (!%p933_p2)  ;;  %v354_v57 = vld [vmem:[#allocation3] sm:$0xff] (!%p933_p2)  ;;  %vm531_vm6 = vcmask (!%p933_p2), 392512   ;;  %vm538_vm7 = vcmask (!%p933_p2), 458112   ;;  %vm545_vm8 = vcmask (!%p933_p2), 523712  }
  0x64   : > { %v1514_v48 = vadd.s32 (!%p933_p2), %v344_v43, %v1508_v44  ;;  %v505_v52 = vadd.s32 (!%p933_p2), 4294967280, %v1508_v44  ;;  %v349_v54 = vld [vmem:[#allocation2 + $0x18] sm:$0xff] (!%p933_p2)  ;;  %v356_v0 = vld [vmem:[#allocation3 + $0x10] sm:$0xff] (!%p933_p2)  ;;  %v350_v1 = vld [vmem:[#allocation2 + $0x20] sm:$0xff] (!%p933_p2)  ;;  %v1562_v41 = vsub.s32 (!%p933_p2), %v1508_v44, %v1510_v45  ;;  %v512_v42 = vadd.s32 (!%p933_p2), 4294967272, %v1508_v44 }
  0x65   : > { %v357_v6 = vld [vmem:[#allocation3 + $0x18] sm:$0xff] (!%p933_p2)  ;;  %v351_v7 = vld [vmem:[#allocation2 + $0x28] sm:$0xff] (!%p933_p2)  ;;  %v358_v13 = vld [vmem:[#allocation3 + $0x20] sm:$0xff] (!%p933_p2)  ;;  %v498_v43 = vadd.s32 (!%p933_p2), 4294967288, %v1508_v44  ;;  %vm547_vm9 = vcmask (!%p933_p2), 523264   ;;  %vm749_vm10 = vcmask (!%p933_p2), 1043456  }
  0x66   : > { %vm370_vm0 = vcmp.lt.s32.totalorder (!%p933_p2), %v1514_v48, 324  ;;  %v1523_v59 = vsub.s32 (!%p933_p2), %v505_v52, %v1510_v45  ;;  %v367_v8 = vld [vmem:[%s1485_s7 + $0x28] sm:$0xff] (!%p933_p2)  ;;  %v352_v19 = vld [vmem:[#allocation2 + $0x30] sm:$0xff] (!%p933_p2)  ;;  %v353_v26 = vld [vmem:[#allocation2 + $0x38] sm:$0xff] (!%p933_p2)  ;;  %v519_v48 = vadd.s32 (!%p933_p2), 4294967264, %v1508_v44  ;;  %vm745_vm11 = vcmask (!%p933_p2), 31744  }
  0x67   : > { %v375_v60 = vsel (!%p933_p2), %vm370_vm0, %v364_v47, 0.0  ;;  %v373_v61 = vsel (!%p933_p2), %vm370_vm0, %v362_v49, 0.0  ;;  %v376_v62 = vsel (!%p933_p2), %vm370_vm0, %v365_v50, 0.0  ;;  %v374_v63 = vsel (!%p933_p2), %vm370_vm0, %v363_v51, 0.0  ;;  %v359_v20 = vld [vmem:[#allocation3 + $0x28] sm:$0xff] (!%p933_p2)  ;;  %v360_v27 = vld [vmem:[#allocation3 + $0x30] sm:$0xff] (!%p933_p2) }
  0x68   : > { %v391_v2 = vadd.f32 %v375_v60, %v348_v46  ;;  %v389_v3 = vadd.f32 %v373_v61, %v346_v53  ;;  %v392_v4 = vadd.f32 %v376_v62, %v349_v54  ;;  %v390_v5 = vadd.f32 %v374_v63, %v347_v55  ;;  %v361_v32 = vld [vmem:[#allocation3 + $0x38] sm:$0xff]  ;;  %v479_v55 = vld [vmem:[%s1719_s1 + $0x10] sm:$0xff]  ;;  %v481_v61 = vld [vmem:[%s1719_s1 + $0x20] sm:$0xff] }
  0x69   : > { %v382_v9 = vsel %vm370_vm0, %v363_v51, -inf  ;;  %v381_v10 = vsel %vm370_vm0, %v362_v49, -inf  ;;  %v383_v11 = vsel %vm370_vm0, %v364_v47, -inf  ;;  %v377_v12 = vsel %vm370_vm0, %v366_v58, 0.0  ;;  %v477_v49 = vld [vmem:[%s1719_s1] sm:$0xff]  ;;  %v482_v62 = vld [vmem:[%s1719_s1 + $0x28] sm:$0xff] }
  0x6a   : > { %407 = vst [vmem:[#allocation2 + $0x10] sm:$0xff] %v391_v2  ;;  %433 = vadd.xlane.f32.xlu1 %v391_v2  ;;  %405 = vst [vmem:[#allocation2] sm:$0xff] %v389_v3  ;;  %429 = vadd.xlane.f32.xlu0 %v389_v3  ;;  %v398_v15 = vmax.f32 %v355_v56, %v382_v9  ;;  %v397_v16 = vmax.f32 %v354_v57, %v381_v10  ;;  %v384_v18 = vsel %vm370_vm0, %v365_v50, -inf  ;;  %v478_v50 = vld [vmem:[%s1719_s1 + $0x8] sm:$0xff]  ;;  %v1305_v53 = vmov 0.0|0.0   ;;  %v480_v56 = vld [vmem:[%s1719_s1 + $0x18] sm:$0xff] }
  0x6b   : > { %408 = vst [vmem:[#allocation2 + $0x18] sm:$0xff] %v392_v4  ;;  %406 = vst [vmem:[#allocation2 + $0x8] sm:$0xff] %v390_v5  ;;  %v399_v17 = vmax.f32 %v356_v0, %v383_v11  ;;  %v393_v22 = vadd.f32 %v377_v12, %v350_v1  ;;  %v400_v23 = vmax.f32 %v357_v6, %v384_v18  ;;  %v378_v24 = vsel %vm370_vm0, %v367_v8, 0.0  ;;  %v483_v2 = vld [vmem:[%s1719_s1 + $0x30] sm:$0xff]  ;;  %v484_v3 = vld [vmem:[%s1719_s1 + $0x38] sm:$0xff] }
  0x6c   : > { %v385_v25 = vsel %vm370_vm0, %v366_v58, -inf  ;;  %414 = vst [vmem:[#allocation3 + $0x8] sm:$0xff] %v398_v15  ;;  %413 = vst [vmem:[#allocation3] sm:$0xff] %v397_v16  ;;  %v394_v28 = vadd.f32 %v378_v24, %v351_v7  ;;  %v379_v30 = vsel %vm370_vm0, %v368_v14, 0.0  ;;  %v386_v31 = vsel %vm370_vm0, %v367_v8, -inf  ;;  %1006 = vmatprep.subr.bf16.mxu0 %v1305_v53  ;;  %1018 = vmatprep.subr.bf16.mxu1 %v1305_v53 }
  0x6d   : > { %415 = vst [vmem:[#allocation3 + $0x10] sm:$0xff] %v399_v17  ;;  %v401_v29 = vmax.f32 %v358_v13, %v385_v25  ;;  %409 = vst [vmem:[#allocation2 + $0x20] sm:$0xff] %v393_v22  ;;  %v395_v33 = vadd.f32 %v379_v30, %v352_v19  ;;  %v402_v34 = vmax.f32 %v359_v20, %v386_v31  ;;  %v380_v35 = vsel %vm370_vm0, %v369_v21, 0.0 }
  0x6e   : > { %416 = vst [vmem:[#allocation3 + $0x18] sm:$0xff] %v400_v23  ;;  %v387_v36 = vsel %vm370_vm0, %v368_v14, -inf  ;;  %435 = vadd.xlane.f32.xlu1 %v392_v4  ;;  %431 = vadd.xlane.f32.xlu0 %v390_v5  ;;  %410 = vst [vmem:[#allocation2 + $0x28] sm:$0xff] %v394_v28  ;;  %v396_v37 = vadd.f32 %v380_v35, %v353_v26  ;;  %v388_v39 = vsel %vm370_vm0, %v369_v21, -inf  ;;  %v526_v54 = vadd.s32 4294967256, %v1508_v44 }
  0x6f   : > { %417 = vst [vmem:[#allocation3 + $0x20] sm:$0xff] %v401_v29  ;;  %v403_v38 = vmax.f32 %v360_v27, %v387_v36  ;;  %411 = vst [vmem:[#allocation2 + $0x30] sm:$0xff] %v395_v33  ;;  %v404_v40 = vmax.f32 %v361_v32, %v388_v39  ;;  %v1567_v46 = vsub.s32 %v512_v42, %v1510_v45  ;;  %v533_v60 = vadd.s32 4294967248, %v1508_v44 }
  0x70   : > { %418 = vst [vmem:[#allocation3 + $0x28] sm:$0xff] %v402_v34  ;;  %412 = vst [vmem:[#allocation2 + $0x38] sm:$0xff] %v396_v37  ;;  %v1570_v47 = vsub.s32 %v498_v43, %v1510_v45  ;;  %v1580_v51 = vsub.s32 %v519_v48, %v1510_v45  ;;  %v1007_v52 = vpack.c.bf16 %v478_v50, %v477_v49  ;;  %v540_v1 = vadd.s32 4294967240, %v1508_v44 }
  0x71   : > { %419 = vst [vmem:[#allocation3 + $0x30] sm:$0xff] %v403_v38  ;;  %420 = vst [vmem:[#allocation3 + $0x38] sm:$0xff] %v404_v40  ;;  %v1590_v57 = vsub.s32 %v526_v54, %v1510_v45  ;;  %v1010_v58 = vpack.c.bf16 %v480_v56, %v479_v55  ;;  %v1600_v63 = vsub.s32 %v533_v60, %v1510_v45  ;;  %v1307_v44 = vmov 0.0  }
  0x72   : > { %463 = vmax.xlane.f32.xlu1 %v398_v15  ;;  %461 = vmax.xlane.f32.xlu0 %v397_v16  ;;  %v1013_v0 = vpack.c.bf16 %v482_v62, %v481_v61  ;;  %v1610_v4 = vsub.s32 %v540_v1, %v1510_v45  ;;  %v1016_v5 = vpack.c.bf16 %v484_v3, %v483_v2  ;;  %v742_v61 = vld [vmem:[%s1721_s3] sm:$0xf]  ;;  %vm829_vm12 = vcmask 516096  }
  0x73   : > { %1008 = vmatpush3.bf16.msra.mxu0 %v1007_v52  ;;  %1020 = vmatpush3.bf16.msra.mxu1 %v1007_v52  ;;  %v485_v62 = vld [vmem:[%s1720_s2] sm:$0x1] }
  0x74   : > { %1009 = vmatprep.subr.bf16.mxu0 %v1305_v53  ;;  %1021 = vmatprep.subr.bf16.mxu1 %v1305_v53 }
  0x75   : > { %979 = vmatprep.mubr.msk.f32.mxu0 %vm1306_vm1, %v1307_v44  ;;  %998 = vmatprep.mubr.msk.f32.mxu1 %vm1306_vm1, %v1307_v44 }
  0x76   : > { %465 = vmax.xlane.f32.xlu1 %v399_v17  ;;  %437 = vadd.xlane.f32.xlu0 %v393_v22 }
  0x77   : > { %1011 = vmatpush3.bf16.msra.mxu0 %v1010_v58  ;;  %1023 = vmatpush3.bf16.msra.mxu1 %v1010_v58 }
  0x78   : > { %1012 = vmatprep.subr.bf16.mxu0 %v1305_v53  ;;  %1024 = vmatprep.subr.bf16.mxu1 %v1305_v53 }
  0x7a   : > { %467 = vmax.xlane.f32.xlu1 %v400_v23  ;;  %439 = vadd.xlane.f32.xlu0 %v394_v28 }
  0x7b   : > { %1014 = vmatpush3.bf16.msra.mxu0 %v1013_v0  ;;  %1026 = vmatpush3.bf16.msra.mxu1 %v1013_v0 }
  0x7c   : > { %1015 = vmatprep.subr.bf16.mxu0 %v1305_v53  ;;  %1027 = vmatprep.subr.bf16.mxu1 %v1305_v53 }
  0x7e   : > { %469 = vmax.xlane.f32.xlu1 %v401_v29  ;;  %441 = vadd.xlane.f32.xlu0 %v395_v33 }
  0x7f   : > { %1017 = vmatpush3.bf16.msra.mxu0 %v1016_v5  ;;  %1029 = vmatpush3.bf16.msra.mxu1 %v1016_v5 }
  0x80   : > { %1001 = vmatprep.subr.mxu0 %v1307_v44 }
  0x82   : > { %471 = vmax.xlane.f32.xlu1 %v402_v34  ;;  %443 = vadd.xlane.f32.xlu0 %v396_v37 }
  0x86   : > { %473 = vmax.xlane.f32.xlu0 %v403_v38  ;;  %475 = vmax.xlane.f32.xlu1 %v404_v40 }
  0xf7   : > { %v434_v6 = vpop.xlane.xlu1 %433  ;;  %v430_v7 = vpop.xlane.xlu0 %429 }
  0xf8   : > { %v445_v8 = vmul.f32 0.0030864198, %v430_v7  ;;  %v447_v45 = vmul.f32 0.0030864198, %v434_v6  ;;  %v743_v7 = vld [vmem:[%s1722_s4] sm:$0x1] }
  0xfa   : > { %v497_v13 = vrot.slane %v445_v8, %v1562_v41  ;;  %v509_v16 = vrot.slane %v447_v45, %v1523_v59  ;;  %v744_v8 = vmul.f32 2.0, %v743_v7 }
  0xfb   : > { %v436_v9 = vpop.xlane.xlu1 %435  ;;  %v432_v10 = vpop.xlane.xlu0 %431 }
  0xfc   : > { %v448_v11 = vmul.f32 0.0030864198, %v436_v9  ;;  %v446_v12 = vmul.f32 0.0030864198, %v432_v10 }
  0xfe   : > { %v516_v14 = vrot.slane %v448_v11, %v1567_v46  ;;  %v502_v15 = vrot.slane %v446_v12, %v1570_v47 }
  0xff   : > { %v464_v17 = vpop.xlane.xlu1 %463  ;;  %v462_v18 = vpop.xlane.xlu0 %461 }
 0x100   : > { %v504_v19 = vsel %vm503_vm2, %v502_v15, %v497_v13  ;;  %v636_v20 = vrot.slane %v464_v17, %v1570_v47  ;;  %v632_v21 = vrot.slane %v462_v18, %v1562_v41 }
 0x101   : > { %v511_v22 = vsel %vm510_vm3, %v509_v16, %v504_v19 }
 0x102   : > { %v637_v23 = vsel %vm503_vm2, %v636_v20, %v632_v21  ;;  %v518_v24 = vsel %vm517_vm4, %v516_v14, %v511_v22 }
 0x103   : > { %v466_v25 = vpop.xlane.xlu1 %465  ;;  %v438_v26 = vpop.xlane.xlu0 %437 }
 0x104   : > { %v641_v27 = vrot.slane %v466_v25, %v1523_v59  ;;  %v449_v28 = vmul.f32 0.0030864198, %v438_v26 }
 0x106   : > { %v642_v29 = vsel %vm510_vm3, %v641_v27, %v637_v23  ;;  %v523_v30 = vrot.slane %v449_v28, %v1580_v51 }
 0x107   : > { %v468_v31 = vpop.xlane.xlu1 %467  ;;  %v440_v32 = vpop.xlane.xlu0 %439 }
 0x108   : > { %v525_v33 = vsel %vm524_vm5, %v523_v30, %v518_v24  ;;  %v646_v34 = vrot.slane %v468_v31, %v1567_v46  ;;  %v450_v35 = vmul.f32 0.0030864198, %v440_v32 }
 0x10a   : > { %v647_v36 = vsel %vm517_vm4, %v646_v34, %v642_v29  ;;  %v530_v37 = vrot.slane %v450_v35, %v1590_v57 }
 0x10b   : > { %v470_v38 = vpop.xlane.xlu1 %469  ;;  %v442_v59 = vpop.xlane.xlu0 %441 }
 0x10c   : > { %v532_v39 = vsel %vm531_vm6, %v530_v37, %v525_v33  ;;  %v651_v40 = vrot.slane %v470_v38, %v1580_v51  ;;  %v451_v41 = vmul.f32 0.0030864198, %v442_v59 }
 0x10e   : > { %v652_v42 = vsel %vm524_vm5, %v651_v40, %v647_v36  ;;  %v537_v43 = vrot.slane %v451_v41, %v1600_v63 }
 0x10f   : > { %v472_v47 = vpop.xlane.xlu1 %471  ;;  %v444_v46 = vpop.xlane.xlu0 %443 }
 0x110   : > { %v656_v48 = vrot.slane %v472_v47, %v1590_v57  ;;  %v452_v49 = vmul.f32 0.0030864198, %v444_v46  ;;  %v539_v50 = vsel %vm538_vm7, %v537_v43, %v532_v39 }
 0x112   : > { %v657_v52 = vsel %vm531_vm6, %v656_v48, %v652_v42  ;;  %v544_v53 = vrot.slane %v452_v49, %v1610_v4 }
 0x113   : > { %v474_v51 = vpop.xlane.xlu0 %473  ;;  %v476_v54 = vpop.xlane.xlu1 %475 }
 0x114   : > { %v661_v55 = vrot.slane %v474_v51, %v1600_v63  ;;  %v666_v56 = vrot.slane %v476_v54, %v1610_v4  ;;  %v546_v58 = vsel %vm545_vm8, %v544_v53, %v539_v50 }
 0x115   : > { %980 = vmatmul.mubr.msk.f32.vlgmr.msra.gmra.mrb[0].mxu0 %vm547_vm9, %v546_v58 }
 0x116   : > { %v662_v60 = vsel %vm538_vm7, %v661_v55, %v657_v52  ;;  %1003 = vmatprep.mubr.msk.f32.mxu0 %vm1306_vm1, %v1307_v44  ;;  %1002 = vmatpush3.msk.msra.mxu0 %vm749_vm10, %v742_v61 }
 0x117   : > { %v667_v57 = vsel %vm545_vm8, %v666_v56, %v662_v60 }
 0x118   : > { %999 = vmatmul.mubr.msk.f32.vlgmr.msra.gmra.mrb[0].mxu1 %vm547_vm9, %v667_v57 }
 0x1e8   : > { %v616_v63 = vpop.f32.mrb[0].mxu0 }
 0x1e9   : > { %v981_v0 = vpop.f32.mrb[1].mxu0  ;;  %v617_v1 = vadd.f32 %v616_v63, %v485_v62 }
 0x1eb   : > { %v736_v2 = vpop.f32.mrb[0].mxu1  ;;  %v620_v5 = vmax.f32 %v617_v1, 0.0 }
 0x1ec   : > { %v737_v3 = vadd.f32 %v736_v2, %v485_v62  ;;  %v1000_v4 = vpop.f32.mrb[1].mxu1 }
 0x1ee   : > { %v740_v44 = vmax.f32 %v737_v3, 0.0 }
 0x1f0   : > { %v741_v6 = vadd.f32 %v740_v44, %v620_v5 }
 0x1f2   : > { %1004 = vmatmul.mubr.msk.f32.vlgmr.msra.gmra.mrb[2].mxu0 %vm745_vm11, %v741_v6 }
 0x2c5   : > { %v819_v45 = vpop.f32.mrb[2].mxu0 }
 0x2c6   : > { %v820_v9 = vadd.f32 %v819_v45, %v744_v8  ;;  %v1005_v10 = vpop.f32.mrb[3].mxu0 }
 0x2c8   : > { %v939_v11 = vmul.f32 -1.442695, %v820_v9 }
 0x2ca   : > { %1141 = vpow2.f32 %v939_v11 }
 0x2d4   : > { %v1142_v12 = vpop.eup %1141 }
 0x2d5   : > { %v826_v13 = vadd.f32 1.0, %v1142_v12 }
 0x2d7   : > { %1143 = vrcp.f32 %v826_v13 }
 0x2e1   : > { %v1144_v14 = vpop.eup %1143 }
 0x2e2   : > { %830 = vst.msk [vmem:[%s1494_s16] sm:$0x1] %vm829_vm12, %v1144_v14 }
 0x2e3 PF: > { %s940_s7 = sshll.u32 %s1285_s25, 4  ;;  %s844_s10 = sshll.u32 %s1494_s16, 4  ;;  %s845_s10 = int_to_ptr.vmem [resolvable:$true] %s844_s10 }
 0x2e4   : > { %s1659_s14 = scalar_lea.hbm %s1723_s5, %s940_s7  ;;  %s832_s13 = scalar_lea.sflag [#allocation6], %s255_s6 }
 0x2e5   : > { %s1175_s9 = scalar_lea.vmem %s845_s10, 16  ;;  %p1736_p0 = scmp.ne.s32.totalorder %s1731_s15, 0 }
 0x2e6   : > { %p1176_p4 = scmp.ne.s32.totalorder %s845_s10, %s1175_s9  ;;  %s1308_s17 = smov [#allocation7]  }
 0x2e7   : > { %s1179_s8 = sshll.u32 %s1308_s17, 4  ;;  %s1180_s8 = int_to_ptr.vmem [resolvable:$false] %s1179_s8 }
 0x2e8   : > { %p1177_p1 = pnand %p1176_p4, %p1736_p0  ;;  %s1181_s30 = scalar_lea.vmem %s1180_s8, 32 }
 0x2e9   : > { %p1182_p6 = scmp.lt.s32.totalorder %s845_s10, %s1180_s8  ;;  %p1183_p9 = scmp.lt.s32.totalorder %s1181_s30, %s1175_s9 }
 0x2ea   : > { %p1178_p3 = pneg %p1177_p1 }
 0x2eb   : > { %p1184_p10 = por %p1183_p9, %p1182_p6 }
 0x2ed   : > { %p1185_p11 = pnand %p1184_p10, %p1178_p3 }
 0x2ef   : > { %1188 = shalt.err (!%p1185_p11)
}
 0x2f0   : > { %s1189_s25 = scalar_lea.hbm %s1659_s14, 16  ;;  %s1193_s29 = scalar_lea.hbm %s1723_s5, 32 }
 0x2f1   : > { %p1190_p5 = scmp.ne.s32.totalorder %s1659_s14, %s1189_s25  ;;  %p1194_p12 = scmp.lt.u32.totalorder %s1659_s14, %s1723_s5 }
 0x2f2   : > { %p1195_p7 = scmp.lt.u32.totalorder %s1193_s29, %s1189_s25  ;;  %p1197_p4 = scmp.lt.u32.totalorder %s1189_s25, %s1659_s14 }
 0x2f3   : > { %p1191_p8 = pnand %p1190_p5, %p1736_p0 }
 0x2f4   : > { %p1196_p2 = por %p1195_p7, %p1194_p12 }
 0x2f5   : > { %p1192_p13 = pneg %p1191_p8 }
 0x2f6   : > { %p1198_p1 = por %p1197_p4, %p1196_p2 }
 0x2f8   : > { %p1199_p3 = pnand %p1198_p1, %p1192_p13 }
 0x2fa   : > { %1202 = shalt.err (!%p1199_p3)
}
 0x2fb   : > { %1033 = dma.vmem_to_hbm [thread:$0]  (%p1736_p0), %s845_s10, 16, %s1659_s14, %s832_s13  }
 0x2fc PF: > { %p1044_p6 = scmp.ge.s32.totalorder %s1297_s28, 2  ;;  %s856_s12 = sand.u32 1, %s1257_s18  }
 0x2fd   : > { %p1737_p9 = scmp.ne.s32.totalorder %s1734_s21, 0  ;;  %s857_s24 = scalar_lea.sflag [#allocation6], %s856_s12 }
 0x2ff   : > { %p1040_p10 = pnand %p1044_p6, %p1737_p9 }
 0x301   : > { %1252 = dma.done.wait (!%p1040_p10), %s857_s24, 16  }
 0x302   : > { %1254 = vsyncadd (!%p1040_p10), %s857_s24, 4294967280  ;;  %s21_s28 = sadd.s32 1, %s1297_s28   ;;  %s1738_s9 = sld [smem:[#allocation12_spill]] }
 0x303   : > { %p18_p11 = scmp.ge.s32.totalorder %s21_s28, 8   ;;  %s1739_s15 = sld [smem:[#allocation13_spill]] }
 0x304   : > { %s1740_s14 = sld [smem:[#allocation10_spill]]  ;;  %s1741_s10 = sld [smem:[#allocation11_spill]] }
 0x305   : > { %s1742_s18 = smov %s1261_s19  ;;  %s1743_s19 = smov %s1265_s20 }
 0x306   : > { %s1745_s21 = smov %s1273_s22  ;;  %s1746_s22 = smov %s1277_s23 }
 0x307   : > { %s1748_s24 = smov %s1289_s26  ;;  %s1749_s25 = smov %s1293_s27 }
 0x308   : > { %s1744_s20 = smov %s1738_s9  ;;  %20 = sbr.rel (!%p18_p11) target bundleno = 9 (0x9), region = 97 }
 0x309   : > { %s1747_s23 = smov %s1739_s15 }
 0x30a   : > { %s1750_s26 = smov %s1740_s14  ;;  %s1751_s27 = smov %s1741_s10 }
 0x30f   :  { %861 = vsyncpa [#allocation5], 1 }
 0x310   :  { %863 = vsyncpa [#allocation5 + $0x1], 1 }
 0x311   :  { %864 = vsyncpa [#allocation6], 1 }
 0x312   :  { %866 = vsyncpa [#allocation6 + $0x1], 1 }

</bundles_post_ra>
